<compile_context>
chip_gen: v5e
topology: v5e:2x2
jax: 0.10.0
libtpu: 0.0.40
codegen_flags: <defaults>
</compile_context>

<pallas_src>
import functools
import math

import jax
import jax.numpy as jnp
from jax.experimental import pallas as pl
from jax.experimental.pallas import tpu as pltpu


def _round_up(x, m):
    return ((x + m - 1) // m) * m


def _vmem_capacity_bytes():
    """Physical VMEM of the local TPU generation (128 MiB v5e/v6e, 64 MiB/TC v7x)."""
    try:
        cap = getattr(pltpu.get_tpu_info(), "vmem_capacity_bytes", None)
        if cap:
            return int(cap)
    except Exception:
        pass
    return 64 << 20  # conservative default = smallest current generation


def _vmem_limit(need_bytes, cap):
    """Scoped-VMEM limit: the accurate need + headroom, clamped under the physical size."""
    return int(min(max(need_bytes + (4 << 20), 16 << 20), (cap * 9) // 10))


# -----------------------------------------------------------------------------
# Kernel 1: fused 1x1-conv channel mix (all gdep+1 hop weights applied at hop 0),
#           bias folded onto the hop-0 rows.
# -----------------------------------------------------------------------------
def _channel_mix_kernel(w_ref, b_ref, x_ref, q_ref):
    """w_ref: (G*c_out, C) bf16 resident; b_ref: (G*c_out, 1) f32 resident (bias on the
    hop-0 rows, zeros elsewhere); x_ref: (C, t1) bf16; q_ref: (G*c_out, t1) bf16."""
    q = jnp.dot(w_ref[...], x_ref[...], preferred_element_type=jnp.float32)
    q_ref[...] = (q + b_ref[...]).astype(q_ref.dtype)


# -----------------------------------------------------------------------------
# Kernel 2: mix-hop propagation, Horner over powers of a^T.
# -----------------------------------------------------------------------------
def _propagate_kernel(q_ref, a_ref, o_ref, *, gdep, c_out, blk, v):
    """q_ref: (G, c_out, blk, V) bf16 (Q_k = W_hat_k @ X for this NL-block);
    a_ref: (V, V) bf16 = a_norm^T (resident); o_ref: (c_out, blk, V) f32."""
    a_t = a_ref[...]
    s = q_ref[gdep].astype(jnp.float32).reshape(c_out * blk, v)
    for k in range(gdep - 1, -1, -1):
        # bf16 MXU operand + f32 accumulate; the two per-hop casts are the minimum that
        # keeps the matmul on the bf16 MXU path (an f32 matmul would push kernel 2 over
        # the MXU roofline on v5e, which costs more than the VPU cast work there).
        s = q_ref[k].astype(jnp.float32).reshape(c_out * blk, v) + jnp.dot(
            s.astype(jnp.bfloat16), a_t, preferred_element_type=jnp.float32)
    o_ref[...] = s.reshape(c_out, blk, v)


def _pick_blocks(nl, v, c, g, c_out, vmem_cap):
    """Choose (blk, nlp, m):
      blk : kernel-2 block along the flattened N*L axis
      nlp : N*L padded up to a multiple of blk
      m   : kernel-1 tile-width multiplier (t1 = m * blk * V)
    Layout constraints: blk % 16 == 0 (bf16 sublanes of the (blk,V) Q tiles) and
    blk*V % 128 == 0 (lane-dense kernel-1 tiles).  Sizes are grown until the per-step
    streamed set reaches the multi-MiB range (HBM-roofline territory) while
    residents + 2 pipeline buffers + f32 temporaries stay inside the generation's VMEM,
    keeping >= 2 grid steps so v7x's two TensorCores both get work and the zero-padded
    tail of N*L stays bounded."""
    gc = g * c_out
    vp = _round_up(v, 128)                                  # lane padding of V in VMEM
    unit = math.lcm(16, 128 // math.gcd(v, 128))

    # kernel-2 per-N*L-row VMEM bytes: streamed (Q bf16 + out f32) and f32 temporaries
    stream_row = vp * (gc * 2 + c_out * 4)
    temp_row = vp * c_out * 4 * 2
    resident = _round_up(v, 16) * vp * 2 + (2 << 20)        # a^T + fixed margin

    budget = (vmem_cap * 45) // 100                         # generation-aware soft budget
    per_step_cap = 16 << 20                                 # diminishing returns beyond this

    max_by_vmem = max(unit, (budget - resident) // (2 * stream_row + temp_row))
    max_by_step = max(unit, per_step_cap // stream_row)
    max_by_grid = max(unit, _round_up(nl, 2 * unit) // 2)   # grid2 >= 2, bounded padding
    blk = max(unit, (min(max_by_vmem, max_by_step, max_by_grid) // unit) * unit)

    nlp = _round_up(nl, blk)
    grid2 = nlp // blk

    # kernel 1 streams (C, t1) + (G*c_out, t1) bf16 tiles; grow t1 = m*blk*V while the
    # double-buffered set fits and kernel 1 keeps >= 2 grid steps of its own.
    k1_row = v * 2 * (_round_up(c, 16) + _round_up(gc, 16))
    m = 1
    for cand in range(1, grid2 + 1):
        if grid2 % cand:
            continue
        if grid2 >= 2 and grid2 // cand < 2:
            continue
        if 2 * cand * blk * k1_row + (2 << 20) > budget:
            continue
        if cand * blk * k1_row > per_step_cap:
            continue
        m = cand
    return blk, nlp, m


def mixprop_forward(x, adj, weight, bias, *, gdep, alpha):
    """x: (N, C, V, L) f32; adj: (V, V); weight: (c_out, (gdep+1)*C); bias: (c_out,).
    Returns (N, c_out, V, L) f32, matching MixProp.forward."""
    N, C, V, L = x.shape
    G = gdep + 1
    c_out = weight.shape[0]
    assert weight.shape[1] == G * C

    # --- tiny (V,V)/(c_out,G*C) precompute hoisted to wrapper JAX ---
    a = adj + jnp.eye(V, dtype=adj.dtype)
    a = a / jnp.sum(a, axis=1, keepdims=True)    # same div-by-zero hazard as the PyTorch code
    a_t = a.T.astype(jnp.bfloat16)               # propagation is h @ a^T

    w3 = weight.reshape(c_out, G, C)                                   # W_g
    tail = jnp.cumsum(w3[:, ::-1, :], axis=1)[:, ::-1, :] - w3         # sum_{g>k} W_g
    coef = (1.0 - alpha) ** jnp.arange(G, dtype=weight.dtype)
    w_hat = coef[None, :, None] * (w3 + alpha * tail)                  # (c_out, G, C)
    w_flat = jnp.transpose(w_hat, (1, 0, 2)).reshape(G * c_out, C).astype(jnp.bfloat16)
    # bias folded onto the hop-0 rows (hop 0 is never propagated in the Horner loop,
    # so adding it there is exact); kernel 2 carries no bias input at all.
    b_col = jnp.zeros((G * c_out, 1), jnp.float32).at[:c_out, 0].set(
        bias.astype(jnp.float32))

    # --- block sizing from the actual VMEM capacity of this generation ---
    NL = N * L
    vmem_cap = _vmem_capacity_bytes()
    blk, NLp, m = _pick_blocks(NL, V, C, G, c_out, vmem_cap)
    t1 = m * blk * V                             # kernel-1 lane width (multiple of 128)
    Vp = _round_up(V, 128)

    # --- layout plumbing (wrapper XLA pass; see TODO(synk) above) ---
    x_cm = jnp.transpose(x, (1, 0, 3, 2)).astype(jnp.bfloat16).reshape(C, NL, V)
    if NLp != NL:
        x_cm = jnp.pad(x_cm, ((0, 0), (0, NLp - NL), (0, 0)))
    x_flat = x_cm.reshape(C, NLp * V)            # free metadata reshape

    # --- kernel 1: channel mix over the flattened NL*V axis (lane-dense tiles) ---
    grid1 = (NLp * V) // t1
    k1_need = (_round_up(G * c_out, 16) * _round_up(C, 128) * 2        # resident weights
               + _round_up(G * c_out, 8) * 128 * 4                     # resident bias col
               + 2 * t1 * 2 * (_round_up(C, 16) + _round_up(G * c_out, 16)))
    q_flat = pl.pallas_call(
        _channel_mix_kernel,
        out_shape=jax.ShapeDtypeStruct((G * c_out, NLp * V), jnp.bfloat16),
        grid=(grid1,),
        in_specs=[pl.BlockSpec((G * c_out, C), lambda i: (0, 0)),      # weights resident
                  pl.BlockSpec((G * c_out, 1), lambda i: (0, 0)),      # bias col resident
                  pl.BlockSpec((C, t1), lambda i: (0, i))],
        out_specs=pl.BlockSpec((G * c_out, t1), lambda i: (0, i)),
        compiler_params=pltpu.CompilerParams(
            dimension_semantics=("parallel",),
            vmem_limit_bytes=_vmem_limit(k1_need, vmem_cap)),
    )(w_flat, b_col, x_flat)

    # free metadata reshape only -- no HBM relayout of the intermediate
    q4 = q_flat.reshape(G, c_out, NLp, V)

    # --- kernel 2: mix-hop propagation (Horner over a^T powers), tiled over NL ---
    grid2 = NLp // blk
    k2_need = (_round_up(V, 16) * Vp * 2                               # resident a^T
               + 2 * blk * Vp * (G * c_out * 2 + c_out * 4)            # streamed Q/out
               + blk * Vp * c_out * 8)                                 # f32 Horner temps
    out_p = pl.pallas_call(
        functools.partial(_propagate_kernel, gdep=gdep, c_out=c_out, blk=blk, v=V),
        out_shape=jax.ShapeDtypeStruct((c_out, NLp, V), jnp.float32),
        grid=(grid2,),
        in_specs=[pl.BlockSpec((G, c_out, blk, V), lambda i: (0, 0, i, 0)),
                  pl.BlockSpec((V, V), lambda i: (0, 0))],             # a^T resident
        out_specs=pl.BlockSpec((c_out, blk, V), lambda i: (0, i, 0)),
        compiler_params=pltpu.CompilerParams(
            dimension_semantics=("parallel",),
            vmem_limit_bytes=_vmem_limit(k2_need, vmem_cap)),
    )(q4, a_t)

    # back to NCHW: (c_out, NLpad, V) -> (N, c_out, V, L)   (wrapper XLA pass; see TODO)
    out = out_p[:, :NL, :].reshape(c_out, N, L, V)
    return jnp.transpose(out, (1, 0, 3, 2))


def mixprop_reference(x, adj, weight, bias, *, gdep, alpha):
    """Plain-JAX reference mirroring the PyTorch forward exactly."""
    V = adj.shape[0]
    a = adj + jnp.eye(V, dtype=x.dtype)
    a = a / jnp.sum(a, axis=1, keepdims=True)
    h = x
    out = [h]
    for _ in range(gdep):
        h = alpha * x + (1.0 - alpha) * jnp.einsum(
            'ncwl,vw->ncvl', h, a, precision='highest')
        out.append(h)
    ho = jnp.concatenate(out, axis=1)
    return (jnp.einsum('oc,ncvl->novl', weight, ho, precision='highest')
            + bias[None, :, None, None])


if __name__ == "__main__":
    # small shapes consistent with MixProp: batch=2, c_in=4, nodes=16, seq=16
    # (seq=16 so N*L=32 gives a 2-step grid for both kernels at toy size).
    N, C, V, L = 2, 4, 16, 16
    gdep, alpha, c_out = 2, 0.3, 8
    # NOTE: self.dropout is stored by __init__ but never applied in forward.

    key = jax.random.PRNGKey(0)
    kx, ka, kw, kb = jax.random.split(key, 4)
    x = jax.random.normal(kx, (N, C, V, L), dtype=jnp.float32)
    adj = jax.random.uniform(ka, (V, V), dtype=jnp.float32)
    weight = 0.1 * jax.random.normal(kw, (c_out, (gdep + 1) * C), dtype=jnp.float32)
    bias = 0.1 * jax.random.normal(kb, (c_out,), dtype=jnp.float32)

    out = mixprop_forward(x, adj, weight, bias, gdep=gdep, alpha=alpha)
    out = jax.block_until_ready(out)

    ref = mixprop_reference(x, adj, weight, bias, gdep=gdep, alpha=alpha)
    assert out.shape == (N, c_out, V, L), out.shape
    max_err = float(jnp.max(jnp.abs(out - ref)))
    assert jnp.allclose(out, ref, rtol=2e-2, atol=2e-2), max_err

    print("KERNEL_OK")
</pallas_src>

<mosaic_0001>
module attributes {stable_mosaic.version = 11 : i64} {
  func.func @_channel_mix_kernel(%arg0: i32, %arg1: memref<24x4xbf16, #tpu.memory_space<vmem>>, %arg2: memref<24x1xf32, #tpu.memory_space<vmem>>, %arg3: memref<4x256xbf16, #tpu.memory_space<vmem>>, %arg4: memref<24x256xbf16, #tpu.memory_space<vmem>>) attributes {dimension_semantics = [#tpu.dimension_semantics<parallel>], iteration_bounds = array<i64: 2>, scalar_prefetch = 0 : i64, scratch_operands = 0 : i64, tpu.core_type = #tpu.core_type<tc>, window_params = [{pipeline_mode = #tpu.pipeline_mode<synchronous>, transform_indices = @transform_0, window_bounds = array<i64: 24, 4>}, {pipeline_mode = #tpu.pipeline_mode<synchronous>, transform_indices = @transform_1, window_bounds = array<i64: 24, 1>}, {transform_indices = @transform_2, window_bounds = array<i64: 4, 256>}, {transform_indices = @transform_3, window_bounds = array<i64: 24, 256>}]} {
    %c0 = arith.constant 0 : index
    %c0_0 = arith.constant 0 : index
    %0 = vector.load %arg1[%c0, %c0_0] : memref<24x4xbf16, #tpu.memory_space<vmem>>, vector<24x4xbf16>
    %c0_1 = arith.constant 0 : index
    %c0_2 = arith.constant 0 : index
    %1 = vector.load %arg3[%c0_1, %c0_2] : memref<4x256xbf16, #tpu.memory_space<vmem>>, vector<4x256xbf16>
    %cst = arith.constant dense<0.000000e+00> : vector<24x256xf32>
    %2 = tpu.matmul %0, %1, %cst {dimension_numbers = #tpu.dot_dimension_numbers<[1], [0], [0], [1], [0, 0, 1, 1], [], []>} : vector<24x4xbf16>, vector<4x256xbf16>, vector<24x256xf32> -> vector<24x256xf32>
    %c0_3 = arith.constant 0 : index
    %c0_4 = arith.constant 0 : index
    %3 = vector.load %arg2[%c0_3, %c0_4] : memref<24x1xf32, #tpu.memory_space<vmem>>, vector<24x1xf32>
    %4 = vector.broadcast %3 : vector<24x1xf32> to vector<24x256xf32>
    %5 = arith.addf %2, %4 : vector<24x256xf32>
    %6 = arith.truncf %5 : vector<24x256xf32> to vector<24x256xbf16>
    %c0_5 = arith.constant 0 : index
    %c0_6 = arith.constant 0 : index
    %7 = vector.load %arg4[%c0_5, %c0_6] : memref<24x256xbf16, #tpu.memory_space<vmem>>, vector<24x256xbf16>
    tpu.vector_store %arg4[%c0_5, %c0_6], %6 {strides = array<i32>} : memref<24x256xbf16, #tpu.memory_space<vmem>>, vector<24x256xbf16>,
    return
  }
  func.func @transform_0(%arg0: i32) -> (i32, i32) {
    %c0_i32 = arith.constant 0 : i32
    %c0_i32_0 = arith.constant 0 : i32
    %c0_i32_1 = arith.constant 0 : i32
    return %c0_i32, %c0_i32_0 : i32, i32
  }
  func.func @transform_1(%arg0: i32) -> (i32, i32) {
    %c0_i32 = arith.constant 0 : i32
    %c0_i32_0 = arith.constant 0 : i32
    %c0_i32_1 = arith.constant 0 : i32
    return %c0_i32, %c0_i32_0 : i32, i32
  }
  func.func @transform_2(%arg0: i32) -> (i32, i32) {
    %c0_i32 = arith.constant 0 : i32
    %c0_i32_0 = arith.constant 0 : i32
    return %c0_i32, %arg0 : i32, i32
  }
  func.func @transform_3(%arg0: i32) -> (i32, i32) {
    %c0_i32 = arith.constant 0 : i32
    %c0_i32_0 = arith.constant 0 : i32
    return %c0_i32, %arg0 : i32, i32
  }
}

</mosaic_0001>

<bundles_post_ra>
// kernel: tpu_custom_call.1
= control target key start
LH: loop header
LB: loop body
LE: loop exit
PB: predicated region body
PF: predicated region fallthrough
CT: control target
= control target key end

     0   :  { %8 = vsyncpa [#allocation3], 0  ;;  %s601_s0 = inlined_call_operand.vmem [shape: bf16[24,4], index: 0, kind: input, shape index: {}]   ;;  %s602_s1 = inlined_call_operand.vmem [shape: f32[24,1], index: 1, kind: input, shape index: {}]   ;;  %s603_s2 = inlined_call_operand.vmem [shape: bf16[4,512], index: 2, kind: input, shape index: {}]   ;;  %s604_s3 = inlined_call_operand.hbm [shape: bf16[24,512], index: 3, kind: output, shape index: {}]  }
   0x1   :  { %10 = vsyncpa [#allocation3 + $0x1], 0  ;;  %s495_s12 = smov 0   ;;  %s497_s13 = smov 0  }
   0x2   :  { %s499_s14 = smov 0   ;;  %s501_s15 = smov 0  }
   0x3 LB: > { %s516_s16 = sadd.s32 4294967295, %s469_s15   ;;  %s339_s17 = sadd.s32 4294967294, %s469_s15   ;;  %s469_s15 = sphi %s501_s15, %s610_s15   ;;  %s465_s14 = sphi %s499_s14, %s609_s14   ;;  %s461_s13 = sphi %s497_s13, %s608_s13   ;;  %s457_s12 = sphi %s495_s12, %s607_s12  }
   0x4   : > { %s520_s18 = sadd.s32 1, %s469_s15   ;;  %s91_s19 = sadd.s32 1, %s465_s14 }
   0x5   : > { %s88_s20 = ssub.s32 %s469_s15, %s520_s18  ;;  %p101_p0 = scmp.ne.s32.totalorder %s465_s14, %s461_s13 }
   0x6   : > { %p89_p1 = scmp.eq.s32.totalorder %s88_s20, 0  ;;  %p102_p2 = scmp.eq.s32.totalorder %s516_s16, 1 }
   0x7   : > { %p107_p3 = scmp.ne.s32.totalorder %s461_s13, %s457_s12  ;;  %p108_p4 = scmp.eq.s32.totalorder %s339_s17, 1 }
   0x8   : > { %s531_s21 = scalar_select %p89_p1, %s465_s14, %s91_s19  }
   0x9   : > { %p533_p5 = por %p102_p2, %p101_p0  ;;  %p537_p6 = por %p108_p4, %p107_p3 }
   0xa   : > { %p342_p7 = scmp.ge.s32.totalorder %s469_s15, 1  ;;  %p141_p8 = scmp.lt.s32.totalorder %s469_s15, 3 }
   0xc   : > { %p142_p9 = pnand %p342_p7, %p141_p8 }
   0xd   : > { %s343_s24 = sshll.u32 (!%p142_p9), %s516_s16, 1  ;;  %s162_s17 = sand.u32 (!%p142_p9), 1, %s461_s13  }
   0xe   : > { %145 = sbr.rel (%p142_p9) target bundleno = 180 (0xb4), region = 32  ;;  %p166_p10 = scmp.lt.s32.totalorder (!%p142_p9), %s343_s24, 3 }
   0xf   : > { %s361_s19 = smul.u32 (!%p142_p9), 24, %s162_s17  ;;  %s358_s20 = sshll.u32 (!%p142_p9), %s516_s16, 3 }
  0x10   : > { %s273_s26 = scalar_lea.hbm (!%p142_p9), %s604_s3, %s358_s20  ;;  %s262_s16 = scalar_lea.sflag (!%p142_p9), [#allocation3], %s162_s17 }
  0x11   : > { %s164_s27 = scalar_lea.vmem (!%p142_p9), [#allocation2], %s361_s19  ;;  %s427_s7 = scalar_lea.hbm (!%p142_p9), %s604_s3, 48 }
  0x12   : > { %s274_s28 = sshll.u32 (!%p142_p9), %s164_s27, 4  ;;  %s569_s28 = int_to_ptr.vmem [resolvable:$true] %s274_s28 }
  0x13   : > { %v177_v0 = vld [vmem:[%s602_s1] sm:$0xff]  ;;  %v179_v1 = vld [vmem:[%s602_s1 + $0x10] sm:$0xff]  ;;  %v471_v2 = vmov 0   ;;  %s612_s24 = smov (!%p166_p10, %s343_s24), 3  ;;  %v178_v4 = vld [vmem:[%s602_s1 + $0x8] sm:$0xff]  ;;  %vm214_vm0 = vcmask 1041408  }
  0x14   : > { %405 = vset.pattern.permute.xlu0 %v471_v2  ;;  %406 = vset.pattern.permute.xlu1 %v471_v2  ;;  %s344_s29 = sshll.u32 %s612_s24, 1  ;;  %v175_v5 = vld [vmem:[%s601_s0 + $0x8] sm:$0xf]  ;;  %v357_v11 = vld [vmem:[%s601_s0] sm:$0xff]  ;;  %vm207_vm1 = vcmask 31744  }
  0x15   : > { %182 = vperm.xlu0 %405, %v177_v0   ;;  %192 = vperm.xlu1 %406, %v179_v1   ;;  %s169_s5 = scalar_lea.vmem %s603_s2, %s344_s29  ;;  %v200_v6 = vunpack.c.l.b16 %v175_v5  ;;  %s276_s29 = sshll.u32 %s273_s26, 4  ;;  %s277_s29 = int_to_ptr.hbm [resolvable:$true] %s276_s29 }
  0x16   : > { %v176_v3 = vld [vmem:[%s169_s5] sm:$0xf]  ;;  %s421_s30 = sshra.s32 %s277_s29, 4  ;;  %s422_s30 = int_to_ptr.hbm [resolvable:$true] %s421_s30 }
  0x17   : > { %204 = vst [vmem:[#allocation1] ss:$4 sm:$0xff] %v176_v3  ;;  %v202_v12 = vpack.c.b16 %v200_v6, %v200_v6  ;;  %s423_s4 = scalar_lea.hbm %s422_s30, 24  ;;  %p428_p0 = scmp.lt.s32.totalorder %s422_s30, %s604_s3 }
  0x18   : > { %p424_p11 = scmp.ne.s32.totalorder %s422_s30, %s423_s4  ;;  %p429_p1 = scmp.lt.s32.totalorder %s427_s7, %s423_s4 }
  0x1a   : > { %p425_p12 = pnand %p424_p11, %p533_p5  ;;  %p430_p2 = por %p429_p1, %p428_p0 }
  0x1c   : > { %p426_p13 = pneg %p425_p12 }
  0x1d   : > { %187 = vperm.xlu0 %405, %v178_v4  }
  0x1e   : > { %v205_v7 = vld.sshfl [vmem:[#allocation1] sm:$0xff pattern:$0x73625140]  ;;  %v206_v8 = vld.sshfl [vmem:[#allocation1 + $0x8] sm:$0xff pattern:$0x73625140]  ;;  %p431_p3 = pnand %p430_p2, %p426_p13 }
  0x1f   : > { %v215_v9 = vsel %vm214_vm0, %v205_v7, 0  ;;  %v217_v10 = vsel %vm214_vm0, %v206_v8, 0 }
  0x20   : > { %226 = vmatpush.bf16.msra.mxu0 %v215_v9  ;;  %359 = vmatpush.bf16.msra.mxu2 %v215_v9 }
  0x21   : > { %244 = vmatpush.bf16.msra.mxu1 %v217_v10  ;;  %360 = vmatpush.bf16.msra.mxu3 %v217_v10 }
  0x23   : > { %349 = vmatmul.msk.bf16.vlgmr.msra.gmra.mxu0 %vm207_vm1, %v357_v11  ;;  %350 = vmatmul.msk.bf16.vlgmr.msra.gmra.mxu2 %vm207_vm1, %v202_v12 }
  0x24   : > { %351 = vmatmul.msk.bf16.vlgmr.msra.gmra.mxu1 %vm207_vm1, %v357_v11  ;;  %352 = vmatmul.msk.bf16.vlgmr.msra.gmra.mxu3 %vm207_vm1, %v202_v12 }
  0x87   : > { %v183_v13 = vpop.permute.xlu0 %182  ;;  %v193_v19 = vpop.permute.xlu1 %192 }
  0x8f   : > { %v188_v23 = vpop.permute.xlu0 %187 }
  0xa0   : > { %v228_v14 = vpop.f32.mrf.mxu0 }
  0xa1   : > { %v229_v15 = vadd.f32 %v228_v14, %v183_v13  ;;  %v246_v16 = vpop.f32.mrf.mxu1 }
  0xa2   : > { %v247_v17 = vadd.f32 %v246_v16, %v183_v13 }
  0xa4   : > { %v255_v18 = vpack.c.bf16 %v247_v17, %v229_v15 }
  0xa6   : > { %258 = vst [vmem:[%s164_s27] sm:$0xff] %v255_v18  ;;  %v233_v20 = vpop.f32.mrf.mxu2 }
  0xa7   : > { %v234_v21 = vadd.f32 %v233_v20, %v193_v19  ;;  %v251_v22 = vpop.f32.mrf.mxu3 }
  0xa8   : > { %v252_v24 = vadd.f32 %v251_v22, %v193_v19  ;;  %v230_v25 = vpop.f32.mrf.mxu0 }
  0xa9   : > { %v231_v26 = vadd.f32 %v230_v25, %v188_v23  ;;  %v248_v27 = vpop.f32.mrf.mxu1 }
  0xaa   : > { %v257_v28 = vpack.c.bf16 %v252_v24, %v234_v21  ;;  %v249_v29 = vadd.f32 %v248_v27, %v188_v23 }
  0xac   : > { %260 = vst [vmem:[%s164_s27 + $0x10] sm:$0xff] %v257_v28  ;;  %v256_v30 = vpack.c.bf16 %v249_v29, %v231_v26 }
  0xae   : > { %259 = vst [vmem:[%s164_s27 + $0x8] sm:$0xff] %v256_v30  ;;  %v235_v31 = vpop.f32.mrf.mxu2 }
  0xaf   : > { %v253_v32 = vpop.f32.mrf.mxu3 }
  0xb0   : > { %434 = shalt.err (!%p431_p3)
}
  0xb1   : > { %s472_s10 = smov 128   ;;  %s473_s11 = smov 256  }
  0xb2   : > { %s474_s17 = smov 8  }
  0xb3   : > { %362 = dma.vmem_to_hbm [thread:$0]  (%p533_p5), %s569_s28, 384, %s277_s29, %s262_s16, %s472_s10, %s473_s11, %s474_s17  }
  0xb4 PF: > { %p368_p4 = scmp.ge.s32.totalorder %s469_s15, 2  ;;  %s291_s19 = sand.u32 1, %s457_s12  }
  0xb5   : > { %s292_s20 = scalar_lea.sflag [#allocation3], %s291_s19 }
  0xb6   : > { %p365_p7 = pnand %p368_p4, %p537_p6 }
  0xb8   : > { %p366_p8 = pneg %p365_p7 }
  0xba   : > { %452 = dma.done.wait (%p366_p8), %s292_s20, 384  }
  0xbb   : > { %454 = vsyncadd (%p366_p8), %s292_s20, 4294966912  ;;  %p13_p9 = scmp.ge.s32.totalorder %s520_s18, 4   ;;  %s607_s12 = smov %s461_s13 }
  0xbc   : > { %s608_s13 = smov %s465_s14  ;;  %s609_s14 = smov %s531_s21 }
  0xbd   : > { %s610_s15 = smov %s520_s18  ;;  %15 = sbr.rel (!%p13_p9) target bundleno = 3 (0x3), region = 67 }
  0xc2   :  { %298 = vsyncpa [#allocation3], 1 }
  0xc3   :  { %300 = vsyncpa [#allocation3 + $0x1], 1 }

</bundles_post_ra>
